<compile_context>
chip_gen: v5e
topology: v5e:2x2
jax: 0.10.0
libtpu: 0.0.40
codegen_flags: <defaults>
</compile_context>

<pallas_src>
import functools
import math

import jax
import jax.numpy as jnp
from jax.experimental import pallas as pl
from jax.experimental.pallas import tpu as pltpu


# ----------------------------- arch-aware tiling knobs -----------------------------

@functools.lru_cache(maxsize=None)
def _arch_knobs():
    """Return (tile_target_cols, vmem_limit_bytes) for the current TPU generation."""
    vmem_cap = None
    try:
        vmem_cap = getattr(pltpu.get_tpu_info(), "vmem_capacity_bytes", None)
    except Exception:
        vmem_cap = None
    if not vmem_cap:
        vmem_cap = 64 * 1024 * 1024            # conservative (v7x-sized) fallback
    if vmem_cap >= 96 * 1024 * 1024:           # v5e / v6e: 128 MiB physical VMEM
        return 1024, 100 * 1024 * 1024
    return 512, 56 * 1024 * 1024               # v7x: leave compiler/pipeline headroom


def _pick_tile(n, target):
    """Largest multiple of 128 that divides n and is <= target; full n when n <= target."""
    if n <= target:
        return n
    t = (target // 128) * 128
    while t >= 128:
        if n % t == 0:
            return t
        t -= 128
    return n  # unreachable for dims padded to a multiple of 128


def _pick_head_tile(n_heads, head_dim, target_cols):
    """Whole heads per grid step; column count must be a multiple of 128 unless full."""
    for cand in range(n_heads, 0, -1):
        if n_heads % cand:
            continue
        cols = cand * head_dim
        if cand == n_heads:
            if cols <= target_cols:
                return cand
            continue
        if cols <= target_cols and cols % 128 == 0:
            return cand
    return n_heads


# ----------------------------- Pallas kernels -----------------------------

def _attn_qv_kernel(h_ref, g_ref, wqv_ref, cos_ref, sa_ref, sb_ref,
                    seg_ref, segT_ref, o_ref, *, eps, inv_sqrt_hd, n_zero):
    """Fused rmsnorm -> q/v projection (bf16 MXU) -> RoPE(q) -> decode attention.

    One grid step handles a contiguous group of heads (lane-dense columns). The cached
    values at positions < start_pos are exact zeros, so the softmax reduces to one
    weight per head on the new value row.
    """
    x = h_ref[...]                                                    # (B, D) f32
    ms = jnp.mean(x * x, axis=-1, keepdims=True)
    xn = (x * jax.lax.rsqrt(ms + eps)) * g_ref[...]                   # rmsnorm (VPU filler)
    xb = xn.astype(wqv_ref.dtype)
    q = jnp.dot(xb, wqv_ref[0], preferred_element_type=jnp.float32)   # (B, tc)
    v = jnp.dot(xb, wqv_ref[1], preferred_element_type=jnp.float32)   # (B, tc)

    # Interleaved-pair RoPE on q, lane-wise:
    #   out[2p]   = q[2p]*cos_p - q[2p+1]*sin_p
    #   out[2p+1] = q[2p]*sin_p + q[2p+1]*cos_p
    # sa is -sin at even lanes (0 at odd), sb is +sin at odd lanes (0 at even), so the
    # wrap-around lanes of the rolls are multiplied by zero.
    tc = q.shape[-1]
    q_rot = (q * cos_ref[...]
             + pltpu.roll(q, shift=tc - 1, axis=1) * sa_ref[...]      # q[i+1] partner
             + pltpu.roll(q, shift=1, axis=1) * sb_ref[...])          # q[i-1] partner

    # Per-head score against the only nonzero cached value row (= v itself); seg is a
    # 0/1 segment-sum matrix mapping lanes -> heads.
    e = jnp.dot(q_rot * v, seg_ref[...], preferred_element_type=jnp.float32)   # (B, H)
    el = (e + 1.0) * inv_sqrt_hd          # reference: energy + mask(=True), then /sqrt(hd)
    e0 = inv_sqrt_hd                      # score of each zero-valued cache position
    m = jnp.maximum(el, e0)
    # n_zero == 0 degrades gracefully to w == 1 (single-element softmax).
    w = jnp.exp(el - m) / (n_zero * jnp.exp(e0 - m) + jnp.exp(el - m))
    # Broadcast per-head weight back to lanes and weight the value row.
    w_full = jnp.dot(w, segT_ref[...], preferred_element_type=jnp.float32)     # (B, tc)
    o_ref[...] = w_full * v


def _matmul_res_kernel(x_ref, w_ref, r_ref, o_ref):
    """o = r + x @ w, one output-column tile per grid step (bf16 weights, f32 acc)."""
    o_ref[...] = r_ref[...] + jnp.dot(
        x_ref[...].astype(w_ref.dtype), w_ref[...], preferred_element_type=jnp.float32)


def _rms_matmul_kernel(x_ref, g_ref, w_ref, o_ref, *, eps):
    """o = rmsnorm(x) @ w, one output-column tile per grid step."""
    x = x_ref[...]
    ms = jnp.mean(x * x, axis=-1, keepdims=True)
    xn = (x * jax.lax.rsqrt(ms + eps)) * g_ref[...]
    o_ref[...] = jnp.dot(xn.astype(w_ref.dtype), w_ref[...],
                         preferred_element_type=jnp.float32)


def _ffn_kernel(h_ref, g_ref, w13_ref, w2_ref, o_ref, acc_ref, xb_ref, *, eps):
    """Fused rmsnorm + SwiGLU FFN + residual, tiled over the (padded) hidden dim.

    Per grid step: stream one stacked (2, D, th) column tile of w1|w3 and the matching
    (th, D) row tile of w2; accumulate the partial w2 contribution into an f32 VMEM
    scratch. The rms-normalized bf16 activation is computed once at step 0 (this grid
    axis is "arbitrary", i.e. sequential on one core) and reused from VMEM scratch.
    """
    @pl.when(pl.program_id(0) == 0)
    def _():
        x = h_ref[...]
        ms = jnp.mean(x * x, axis=-1, keepdims=True)
        xn = (x * jax.lax.rsqrt(ms + eps)) * g_ref[...]
        xb_ref[...] = xn.astype(xb_ref.dtype)
        acc_ref[...] = jnp.zeros_like(acc_ref)

    xb = xb_ref[...]
    h1 = jnp.dot(xb, w13_ref[0], preferred_element_type=jnp.float32)
    h3 = jnp.dot(xb, w13_ref[1], preferred_element_type=jnp.float32)
    act = (h1 * jax.nn.sigmoid(h1)) * h3                              # SiLU(h1) * h3, f32
    acc_ref[...] += jnp.dot(act.astype(w2_ref.dtype), w2_ref[...],
                            preferred_element_type=jnp.float32)

    @pl.when(pl.program_id(0) == pl.num_programs(0) - 1)
    def _():
        o_ref[...] = h_ref[...] + acc_ref[...]                        # residual add


# ----------------------------- wrappers -----------------------------

def attention_block(h, gamma, wqv, cosf, sa, sb, seg, segT, *,
                    eps, inv_sqrt_hd, n_zero, n_heads, head_dim):
    B, D = h.shape
    target, vmem_limit = _arch_knobs()
    th = _pick_head_tile(n_heads, head_dim, target)
    tc = th * head_dim
    kern = functools.partial(_attn_qv_kernel, eps=eps, inv_sqrt_hd=inv_sqrt_hd,
                             n_zero=float(n_zero))
    return pl.pallas_call(
        kern,
        out_shape=jax.ShapeDtypeStruct((B, D), jnp.float32),
        grid=(n_heads // th,),
        in_specs=[
            pl.BlockSpec((B, D), lambda j: (0, 0)),          # residual stream (resident)
            pl.BlockSpec((1, D), lambda j: (0, 0)),          # attn_norm gamma
            pl.BlockSpec((2, D, tc), lambda j: (0, 0, j)),   # stacked wq|wv column tile
            pl.BlockSpec((1, tc), lambda j: (0, j)),         # RoPE cos lanes
            pl.BlockSpec((1, tc), lambda j: (0, j)),         # RoPE -sin @ even lanes
            pl.BlockSpec((1, tc), lambda j: (0, j)),         # RoPE +sin @ odd lanes
            pl.BlockSpec((tc, n_heads), lambda j: (j, 0)),   # lane->head segment matrix
            pl.BlockSpec((n_heads, tc), lambda j: (0, j)),   # head->lane broadcast matrix
        ],
        out_specs=pl.BlockSpec((B, tc), lambda j: (0, j)),
        compiler_params=pltpu.CompilerParams(
            dimension_semantics=("parallel",), vmem_limit_bytes=vmem_limit),
    )(h, gamma.reshape(1, D), wqv, cosf, sa, sb, seg, segT)


def matmul_residual(x, w, res):
    """res + x @ w, tiled over output columns (weight streaming)."""
    M, K = x.shape
    N = w.shape[1]
    target, vmem_limit = _arch_knobs()
    tn = _pick_tile(N, target)
    return pl.pallas_call(
        _matmul_res_kernel,
        out_shape=jax.ShapeDtypeStruct((M, N), jnp.float32),
        grid=(N // tn,),
        in_specs=[pl.BlockSpec((M, K), lambda j: (0, 0)),
                  pl.BlockSpec((K, tn), lambda j: (0, j)),
                  pl.BlockSpec((M, tn), lambda j: (0, j))],
        out_specs=pl.BlockSpec((M, tn), lambda j: (0, j)),
        compiler_params=pltpu.CompilerParams(
            dimension_semantics=("parallel",), vmem_limit_bytes=vmem_limit),
    )(x, w, res)


def rms_matmul(x, gamma, w, *, eps):
    """rmsnorm(x) @ w, tiled over output columns (vocab projection)."""
    M, K = x.shape
    N = w.shape[1]
    target, vmem_limit = _arch_knobs()
    tn = _pick_tile(N, target)
    return pl.pallas_call(
        functools.partial(_rms_matmul_kernel, eps=eps),
        out_shape=jax.ShapeDtypeStruct((M, N), jnp.float32),
        grid=(N // tn,),
        in_specs=[pl.BlockSpec((M, K), lambda j: (0, 0)),
                  pl.BlockSpec((1, K), lambda j: (0, 0)),
                  pl.BlockSpec((K, tn), lambda j: (0, j))],
        out_specs=pl.BlockSpec((M, tn), lambda j: (0, j)),
        compiler_params=pltpu.CompilerParams(
            dimension_semantics=("parallel",), vmem_limit_bytes=vmem_limit),
    )(x, gamma.reshape(1, K), w)


def ffn_block(h, gamma, w13, w2, *, eps):
    M, D = h.shape
    Hd = w13.shape[2]
    target, vmem_limit = _arch_knobs()
    th = _pick_tile(Hd, target)
    return pl.pallas_call(
        functools.partial(_ffn_kernel, eps=eps),
        out_shape=jax.ShapeDtypeStruct((M, D), jnp.float32),
        grid=(Hd // th,),
        in_specs=[pl.BlockSpec((M, D), lambda j: (0, 0)),
                  pl.BlockSpec((1, D), lambda j: (0, 0)),
                  pl.BlockSpec((2, D, th), lambda j: (0, 0, j)),   # stacked w1|w3 tile
                  pl.BlockSpec((th, D), lambda j: (j, 0))],        # matching w2 row tile
        out_specs=pl.BlockSpec((M, D), lambda j: (0, 0)),
        scratch_shapes=[pltpu.VMEM((M, D), jnp.float32),           # f32 accumulator
                        pltpu.VMEM((M, D), jnp.bfloat16)],         # hoisted rmsnorm(x)
        compiler_params=pltpu.CompilerParams(
            dimension_semantics=("arbitrary",), vmem_limit_bytes=vmem_limit),
    )(h, gamma.reshape(1, D), w13, w2)


# ----------------------------- JAX glue -----------------------------

def _rope_lane_tables(head_dim, dim, pos, theta=10000.0):
    """Per-lane cos / sign-folded sin tables for interleaved-pair RoPE at one position."""
    inv = 1.0 / (theta ** (jnp.arange(0, head_dim, 2, dtype=jnp.float32) / head_dim))
    ang = float(pos) * inv                                   # (head_dim//2,)
    cos_h = jnp.repeat(jnp.cos(ang), 2)                      # (head_dim,)
    sin_h = jnp.repeat(jnp.sin(ang), 2)
    parity = jnp.arange(head_dim) % 2
    sa_h = jnp.where(parity == 0, -sin_h, 0.0)               # multiplies q[i+1] at even i
    sb_h = jnp.where(parity == 1, sin_h, 0.0)                # multiplies q[i-1] at odd i
    reps = dim // head_dim
    tile = lambda v: jnp.tile(v.astype(jnp.float32), reps).reshape(1, dim)
    return tile(cos_h), tile(sa_h), tile(sb_h)


def _ffn_hidden_dim(cfg):
    hidden = 4 * cfg["dim"]
    hidden = int(2 * hidden / 3)
    if cfg["ffn_dim_multiplier"] is not None:
        hidden = int(cfg["ffn_dim_multiplier"] * hidden)
    mo = cfg["multiple_of"]
    return mo * ((hidden + mo - 1) // mo)


def _pad_axis(w, axis, mult):
    """Zero-pad `axis` of w up to a multiple of `mult` (exact: padding is inert)."""
    pad = (-w.shape[axis]) % mult
    if not pad:
        return w
    widths = [(0, 0)] * w.ndim
    widths[axis] = (0, pad)
    return jnp.pad(w, widths)


def init_params(key, cfg):
    dim, vocab, nl = cfg["dim"], cfg["vocab_size"], cfg["n_layers"]
    hidden = _ffn_hidden_dim(cfg)
    keys = jax.random.split(key, 2 + 7 * nl)

    def lin(k, fan_in, fan_out):
        # bf16 weights (decode is weight-bandwidth bound); f32 accumulation in-kernel.
        return (jax.random.normal(k, (fan_in, fan_out), jnp.float32) * 0.02).astype(jnp.bfloat16)

    params = {
        "tok_emb": jax.random.normal(keys[0], (vocab, dim), jnp.float32) * 0.02,
        # Pad the vocab projection to a multiple of 128 so column tiles never fall
        # back to a full-width block; padded logits are sliced off at the end.
        "out_proj": _pad_axis(lin(keys[1], dim, vocab), 1, 128),
        "final_norm": jnp.ones((dim,), jnp.float32),
    }
    layers = []
    ki = 2
    for _ in range(nl):
        wq = lin(keys[ki + 0], dim, dim)
        # wk exists in the reference module but its output (cache_k) is never read by
        # the forward pass (scores use values), so it is kept only for parity.
        wk = lin(keys[ki + 1], dim, dim)
        wv = lin(keys[ki + 2], dim, dim)
        wo = lin(keys[ki + 3], dim, dim)
        # Pad the FFN hidden dim to a multiple of 128 (silu(0)*0 == 0 and the padded
        # w2 rows are zero, so the math is exact).
        w1 = _pad_axis(lin(keys[ki + 4], dim, hidden), 1, 128)
        w3 = _pad_axis(lin(keys[ki + 5], dim, hidden), 1, 128)
        w2 = _pad_axis(lin(keys[ki + 6], hidden, dim), 0, 128)
        layers.append({
            "attn_norm": jnp.ones((dim,), jnp.float32),
            "ffn_norm": jnp.ones((dim,), jnp.float32),
            "wqv": jnp.stack([wq, wv]),     # fused q|v weight stream: (2, D, D)
            "wk": wk,
            "wo": wo,
            "w13": jnp.stack([w1, w3]),     # fused gate|up weight stream: (2, D, Hd_pad)
            "w2": w2,                       # (Hd_pad, D)
        })
        ki += 7
    params["layers"] = layers
    return params, hidden


def transformer_forward(params, cfg, tokens, start_pos):
    B, S = tokens.shape
    assert S == 1, "reference module only supports single-token decode steps"
    D, H = cfg["dim"], cfg["n_heads"]
    hd = D // H
    eps = cfg["norm_eps"]
    inv_sqrt_hd = 1.0 / math.sqrt(hd)

    # token-embedding gather (tiny, stays as JAX glue)
    h = jnp.take(params["tok_emb"], tokens[:, 0], axis=0)             # (B, D) f32

    # TODO(synk): start_pos is baked at trace time (one compile per decode position);
    # a deployed decode loop would pass it as a prefetch scalar instead.
    cosf, sa, sb = _rope_lane_tables(hd, D, start_pos)
    head_of_lane = jnp.arange(D, dtype=jnp.int32) // hd
    seg = (head_of_lane[:, None] == jnp.arange(H, dtype=jnp.int32)[None, :]).astype(jnp.float32)
    segT = jnp.transpose(seg)

    # TODO(synk): batching decode tokens to >=8 rows rides the same weight traffic for
    # ~free (all calls here are HBM-bound at B=2); kept at the reference's decode shape.
    for lp in params["layers"]:
        attn = attention_block(h, lp["attn_norm"], lp["wqv"], cosf, sa, sb, seg, segT,
                               eps=eps, inv_sqrt_hd=inv_sqrt_hd, n_zero=start_pos,
                               n_heads=H, head_dim=hd)
        h = matmul_residual(attn, lp["wo"], h)                        # h = h + attn @ wo
        h = ffn_block(h, lp["ffn_norm"], lp["w13"], lp["w2"], eps=eps)

    logits = rms_matmul(h, params["final_norm"], params["out_proj"], eps=eps)
    logits = logits[:, :cfg["vocab_size"]]                            # drop padded columns
    return logits.reshape(B, S, cfg["vocab_size"]).astype(jnp.float32)


# ----------------------------- pure-JAX reference (for the check) -----------------------------

def reference_forward(params, cfg, tokens, start_pos):
    """Direct f32 re-implementation of the PyTorch forward (zero cache materialised)."""
    B, S = tokens.shape
    D, H = cfg["dim"], cfg["n_heads"]
    hd = D // H
    eps = cfg["norm_eps"]
    f32 = lambda w: w.astype(jnp.float32)

    def rms(x, g):
        return g * (x * jax.lax.rsqrt(jnp.mean(x * x, -1, keepdims=True) + eps))

    def rope(x):  # (B, S, H, hd), interleaved pairs
        inv = 1.0 / (10000.0 ** (jnp.arange(0, hd, 2, dtype=jnp.float32) / hd))
        ang = (start_pos + jnp.arange(S, dtype=jnp.float32))[:, None] * inv[None, :]
        cos, sin = jnp.cos(ang), jnp.sin(ang)
        xr = x.reshape(B, S, H, hd // 2, 2)
        re, im = xr[..., 0], xr[..., 1]
        c = cos[None, :, None, :]
        s = sin[None, :, None, :]
        return jnp.stack([re * c - im * s, re * s + im * c], -1).reshape(B, S, H, hd)

    h = jnp.take(params["tok_emb"], tokens, axis=0)                   # (B, S, D)
    L = start_pos + S
    for lp in params["layers"]:
        xn = rms(h, lp["attn_norm"])
        wq, wv = f32(lp["wqv"][0]), f32(lp["wqv"][1])
        xq = rope((xn @ wq).reshape(B, S, H, hd))
        xv = (xn @ wv).reshape(B, S, H, hd)
        cache_v = jnp.zeros((cfg["max_batch_size"], cfg["max_seq_len"], H, hd), jnp.float32)
        cache_v = cache_v.at[:B, start_pos:start_pos + S].set(xv)
        values = cache_v[:B, :L]
        energy = jnp.einsum('nqhd,nkhd->nhqk', xq, values) + 1.0      # mask=True quirk
        scores = jax.nn.softmax(energy / (hd ** 0.5), axis=3)
        out = jnp.einsum('nhqk,nkhd->nqhd', scores, values).reshape(B, S, D)
        h = h + out @ f32(lp["wo"])
        hn = rms(h, lp["ffn_norm"])
        h1 = hn @ f32(lp["w13"][0])
        h3 = hn @ f32(lp["w13"][1])
        h = h + (jax.nn.silu(h1) * h3) @ f32(lp["w2"])
    logits = rms(h, params["final_norm"]) @ f32(params["out_proj"])   # (B, S, vocab_pad)
    return logits[..., :cfg["vocab_size"]]


if __name__ == "__main__":
    # Small shapes chosen to exercise multi-step weight streaming (FFN accumulator over
    # 2 hidden tiles, vocab projection over 2 column tiles) and the vocab/hidden padding.
    cfg = dict(dim=256, n_layers=2, n_heads=4, n_kv_heads=None, vocab_size=1000,
               multiple_of=32, ffn_dim_multiplier=None, norm_eps=1e-5,
               max_batch_size=2, max_seq_len=16)
    key = jax.random.PRNGKey(0)
    pkey, tkey = jax.random.split(key)
    params, hidden_dim = init_params(pkey, cfg)

    B, S = 2, 1                      # reference asserts seq_len == 1 (decode step)
    start_pos = 7
    tokens = jax.random.randint(tkey, (B, S), 0, cfg["vocab_size"])

    logits = transformer_forward(params, cfg, tokens, start_pos)
    jax.block_until_ready(logits)
    assert logits.shape == (B, S, cfg["vocab_size"])
    assert logits.dtype == jnp.float32

    # Numerical check vs. a pure-JAX re-implementation of the reference math
    # (same bf16 weight bits; only the in-kernel bf16 activation casts differ).
    ref = reference_forward(params, cfg, tokens, start_pos)
    err = float(jnp.max(jnp.abs(logits - ref)))
    scale = float(jnp.max(jnp.abs(ref)))
    assert err <= 3e-2 + 2e-2 * scale, f"mismatch: max_err={err}, ref_scale={scale}"

    print("KERNEL_OK")
</pallas_src>

<mosaic_0001>
module attributes {stable_mosaic.version = 11 : i64} {
  func.func @_attn_qv_kernel(%arg0: i32, %arg1: memref<2x256xf32, #tpu.memory_space<vmem>>, %arg2: memref<1x256xf32, #tpu.memory_space<vmem>>, %arg3: memref<2x256x256xbf16, #tpu.memory_space<vmem>>, %arg4: memref<1x256xf32, #tpu.memory_space<vmem>>, %arg5: memref<1x256xf32, #tpu.memory_space<vmem>>, %arg6: memref<1x256xf32, #tpu.memory_space<vmem>>, %arg7: memref<256x4xf32, #tpu.memory_space<vmem>>, %arg8: memref<4x256xf32, #tpu.memory_space<vmem>>, %arg9: memref<2x256xf32, #tpu.memory_space<vmem>>) attributes {dimension_semantics = [#tpu.dimension_semantics<parallel>], iteration_bounds = array<i64: 1>, scalar_prefetch = 0 : i64, scratch_operands = 0 : i64, tpu.core_type = #tpu.core_type<tc>, window_params = [{pipeline_mode = #tpu.pipeline_mode<synchronous>, transform_indices = @transform_0, window_bounds = array<i64: 2, 256>}, {pipeline_mode = #tpu.pipeline_mode<synchronous>, transform_indices = @transform_1, window_bounds = array<i64: 1, 256>}, {transform_indices = @transform_2, window_bounds = array<i64: 2, 256, 256>}, {transform_indices = @transform_3, window_bounds = array<i64: 1, 256>}, {transform_indices = @transform_4, window_bounds = array<i64: 1, 256>}, {transform_indices = @transform_5, window_bounds = array<i64: 1, 256>}, {transform_indices = @transform_6, window_bounds = array<i64: 256, 4>}, {transform_indices = @transform_7, window_bounds = array<i64: 4, 256>}, {transform_indices = @transform_8, window_bounds = array<i64: 2, 256>}]} {
    %c0 = arith.constant 0 : index
    %c0_0 = arith.constant 0 : index
    %0 = vector.load %arg1[%c0, %c0_0] : memref<2x256xf32, #tpu.memory_space<vmem>>, vector<2x256xf32>
    %1 = arith.mulf %0, %0 : vector<2x256xf32>
    %cst = arith.constant dense<0.000000e+00> : vector<2xf32>
    %2 = vector.multi_reduction <add>, %1, %cst [1] : vector<2x256xf32> to vector<2xf32>
    %3 = vector.shape_cast %2 : vector<2xf32> to vector<2x1xf32>
    %cst_1 = arith.constant 2.560000e+02 : f32
    %4 = vector.broadcast %cst_1 : f32 to vector<2x1xf32>
    %5 = arith.divf %3, %4 : vector<2x1xf32>
    %cst_2 = arith.constant 9.99999974E-6 : f32
    %6 = vector.broadcast %cst_2 : f32 to vector<2x1xf32>
    %7 = arith.addf %5, %6 : vector<2x1xf32>
    %8 = math.rsqrt %7 : vector<2x1xf32>
    %9 = vector.broadcast %8 : vector<2x1xf32> to vector<2x256xf32>
    %10 = arith.mulf %0, %9 : vector<2x256xf32>
    %c0_3 = arith.constant 0 : index
    %c0_4 = arith.constant 0 : index
    %11 = vector.load %arg2[%c0_3, %c0_4] : memref<1x256xf32, #tpu.memory_space<vmem>>, vector<1x256xf32>
    %12 = vector.broadcast %11 : vector<1x256xf32> to vector<2x256xf32>
    %13 = arith.mulf %10, %12 : vector<2x256xf32>
    %14 = arith.truncf %13 : vector<2x256xf32> to vector<2x256xbf16>
    %c0_5 = arith.constant 0 : index
    %c0_6 = arith.constant 0 : index
    %c0_7 = arith.constant 0 : index
    %15 = vector.load %arg3[%c0_5, %c0_6, %c0_7] : memref<2x256x256xbf16, #tpu.memory_space<vmem>>, vector<1x256x256xbf16>
    %16 = vector.shape_cast %15 : vector<1x256x256xbf16> to vector<256x256xbf16>
    %cst_8 = arith.constant dense<0.000000e+00> : vector<2x256xf32>
    %17 = tpu.matmul %14, %16, %cst_8 {dimension_numbers = #tpu.dot_dimension_numbers<[1], [0], [0], [1], [0, 0, 1, 1], [], []>} : vector<2x256xbf16>, vector<256x256xbf16>, vector<2x256xf32> -> vector<2x256xf32>
    %c1 = arith.constant 1 : index
    %c0_9 = arith.constant 0 : index
    %c0_10 = arith.constant 0 : index
    %18 = vector.load %arg3[%c1, %c0_9, %c0_10] : memref<2x256x256xbf16, #tpu.memory_space<vmem>>, vector<1x256x256xbf16>
    %19 = vector.shape_cast %18 : vector<1x256x256xbf16> to vector<256x256xbf16>
    %cst_11 = arith.constant dense<0.000000e+00> : vector<2x256xf32>
    %20 = tpu.matmul %14, %19, %cst_11 {dimension_numbers = #tpu.dot_dimension_numbers<[1], [0], [0], [1], [0, 0, 1, 1], [], []>} : vector<2x256xbf16>, vector<256x256xbf16>, vector<2x256xf32> -> vector<2x256xf32>
    %c0_12 = arith.constant 0 : index
    %c0_13 = arith.constant 0 : index
    %21 = vector.load %arg4[%c0_12, %c0_13] : memref<1x256xf32, #tpu.memory_space<vmem>>, vector<1x256xf32>
    %22 = vector.broadcast %21 : vector<1x256xf32> to vector<2x256xf32>
    %23 = arith.mulf %17, %22 : vector<2x256xf32>
    %c255_i32 = arith.constant 255 : i32
    %24 = tpu.dynamic_rotate %17 by %c255_i32 dim 1 : vector<2x256xf32>, i32 -> vector<2x256xf32>
    %c0_14 = arith.constant 0 : index
    %c0_15 = arith.constant 0 : index
    %25 = vector.load %arg5[%c0_14, %c0_15] : memref<1x256xf32, #tpu.memory_space<vmem>>, vector<1x256xf32>
    %26 = vector.broadcast %25 : vector<1x256xf32> to vector<2x256xf32>
    %27 = arith.mulf %24, %26 : vector<2x256xf32>
    %28 = arith.addf %23, %27 : vector<2x256xf32>
    %c1_i32 = arith.constant 1 : i32
    %29 = tpu.dynamic_rotate %17 by %c1_i32 dim 1 : vector<2x256xf32>, i32 -> vector<2x256xf32>
    %c0_16 = arith.constant 0 : index
    %c0_17 = arith.constant 0 : index
    %30 = vector.load %arg6[%c0_16, %c0_17] : memref<1x256xf32, #tpu.memory_space<vmem>>, vector<1x256xf32>
    %31 = vector.broadcast %30 : vector<1x256xf32> to vector<2x256xf32>
    %32 = arith.mulf %29, %31 : vector<2x256xf32>
    %33 = arith.addf %28, %32 : vector<2x256xf32>
    %34 = arith.mulf %33, %20 : vector<2x256xf32>
    %c0_18 = arith.constant 0 : index
    %c0_19 = arith.constant 0 : index
    %35 = vector.load %arg7[%c0_18, %c0_19] : memref<256x4xf32, #tpu.memory_space<vmem>>, vector<256x4xf32>
    %cst_20 = arith.constant dense<0.000000e+00> : vector<2x4xf32>
    %36 = tpu.matmul %34, %35, %cst_20 {dimension_numbers = #tpu.dot_dimension_numbers<[1], [0], [0], [1], [0, 0, 1, 1], [], []>} : vector<2x256xf32>, vector<256x4xf32>, vector<2x4xf32> -> vector<2x4xf32>
    %cst_21 = arith.constant 1.000000e+00 : f32
    %37 = vector.broadcast %cst_21 : f32 to vector<2x4xf32>
    %38 = arith.addf %36, %37 : vector<2x4xf32>
    %cst_22 = arith.constant 1.250000e-01 : f32
    %39 = vector.broadcast %cst_22 : f32 to vector<2x4xf32>
    %40 = arith.mulf %38, %39 : vector<2x4xf32>
    %cst_23 = arith.constant 1.250000e-01 : f32
    %41 = vector.broadcast %cst_23 : f32 to vector<2x4xf32>
    %42 = arith.maximumf %40, %41 : vector<2x4xf32>
    %43 = arith.subf %40, %42 : vector<2x4xf32>
    %44 = math.exp %43 : vector<2x4xf32>
    %cst_24 = arith.constant 1.250000e-01 : f32
    %45 = vector.broadcast %cst_24 : f32 to vector<2x4xf32>
    %46 = arith.subf %45, %42 : vector<2x4xf32>
    %47 = math.exp %46 : vector<2x4xf32>
    %cst_25 = arith.constant 7.000000e+00 : f32
    %48 = vector.broadcast %cst_25 : f32 to vector<2x4xf32>
    %49 = arith.mulf %48, %47 : vector<2x4xf32>
    %50 = arith.subf %40, %42 : vector<2x4xf32>
    %51 = math.exp %50 : vector<2x4xf32>
    %52 = arith.addf %49, %51 : vector<2x4xf32>
    %53 = arith.divf %44, %52 : vector<2x4xf32>
    %c0_26 = arith.constant 0 : index
    %c0_27 = arith.constant 0 : index
    %54 = vector.load %arg8[%c0_26, %c0_27] : memref<4x256xf32, #tpu.memory_space<vmem>>, vector<4x256xf32>
    %cst_28 = arith.constant dense<0.000000e+00> : vector<2x256xf32>
    %55 = tpu.matmul %53, %54, %cst_28 {dimension_numbers = #tpu.dot_dimension_numbers<[1], [0], [0], [1], [0, 0, 1, 1], [], []>} : vector<2x4xf32>, vector<4x256xf32>, vector<2x256xf32> -> vector<2x256xf32>
    %56 = arith.mulf %55, %20 : vector<2x256xf32>
    %c0_29 = arith.constant 0 : index
    %c0_30 = arith.constant 0 : index
    %57 = vector.load %arg9[%c0_29, %c0_30] : memref<2x256xf32, #tpu.memory_space<vmem>>, vector<2x256xf32>
    tpu.vector_store %arg9[%c0_29, %c0_30], %56 {strides = array<i32>} : memref<2x256xf32, #tpu.memory_space<vmem>>, vector<2x256xf32>,
    return
  }
  func.func @transform_0(%arg0: i32) -> (i32, i32) {
    %c0_i32 = arith.constant 0 : i32
    %c0_i32_0 = arith.constant 0 : i32
    %c0_i32_1 = arith.constant 0 : i32
    return %c0_i32, %c0_i32_0 : i32, i32
  }
  func.func @transform_1(%arg0: i32) -> (i32, i32) {
    %c0_i32 = arith.constant 0 : i32
    %c0_i32_0 = arith.constant 0 : i32
    %c0_i32_1 = arith.constant 0 : i32
    return %c0_i32, %c0_i32_0 : i32, i32
  }
  func.func @transform_2(%arg0: i32) -> (i32, i32, i32) {
    %c0_i32 = arith.constant 0 : i32
    %c0_i32_0 = arith.constant 0 : i32
    %c0_i32_1 = arith.constant 0 : i32
    return %c0_i32, %c0_i32_0, %arg0 : i32, i32, i32
  }
  func.func @transform_3(%arg0: i32) -> (i32, i32) {
    %c0_i32 = arith.constant 0 : i32
    %c0_i32_0 = arith.constant 0 : i32
    return %c0_i32, %arg0 : i32, i32
  }
  func.func @transform_4(%arg0: i32) -> (i32, i32) {
    %c0_i32 = arith.constant 0 : i32
    %c0_i32_0 = arith.constant 0 : i32
    return %c0_i32, %arg0 : i32, i32
  }
  func.func @transform_5(%arg0: i32) -> (i32, i32) {
    %c0_i32 = arith.constant 0 : i32
    %c0_i32_0 = arith.constant 0 : i32
    return %c0_i32, %arg0 : i32, i32
  }
  func.func @transform_6(%arg0: i32) -> (i32, i32) {
    %c0_i32 = arith.constant 0 : i32
    %c0_i32_0 = arith.constant 0 : i32
    return %arg0, %c0_i32 : i32, i32
  }
  func.func @transform_7(%arg0: i32) -> (i32, i32) {
    %c0_i32 = arith.constant 0 : i32
    %c0_i32_0 = arith.constant 0 : i32
    return %c0_i32, %arg0 : i32, i32
  }
  func.func @transform_8(%arg0: i32) -> (i32, i32) {
    %c0_i32 = arith.constant 0 : i32
    %c0_i32_0 = arith.constant 0 : i32
    return %c0_i32, %arg0 : i32, i32
  }
}

</mosaic_0001>

<bundles_post_ra>
// kernel: tpu_custom_call.1
= control target key start
LH: loop header
LB: loop body
LE: loop exit
PB: predicated region body
PF: predicated region fallthrough
CT: control target
= control target key end

     0   :  { %13 = vsyncpa [#allocation3], 0  ;;  %s1419_s0 = inlined_call_operand.vmem [shape: f32[2,256], index: 0, kind: input, shape index: {}]   ;;  %s1420_s1 = inlined_call_operand.vmem [shape: f32[1,256], index: 1, kind: input, shape index: {}]   ;;  %s1421_s2 = inlined_call_operand.hbm [shape: bf16[2,256,256], index: 2, kind: input, shape index: {}]   ;;  %s1422_s3 = inlined_call_operand.vmem [shape: f32[1,256], index: 3, kind: input, shape index: {}]   ;;  %s1423_s4 = inlined_call_operand.vmem [shape: f32[1,256], index: 4, kind: input, shape index: {}]   ;;  %s1424_s5 = inlined_call_operand.vmem [shape: f32[1,256], index: 5, kind: input, shape index: {}]   ;;  %s1425_s6 = inlined_call_operand.vmem [shape: f32[256,4], index: 6, kind: input, shape index: {}]   ;;  %s1426_s7 = inlined_call_operand.vmem [shape: f32[4,256], index: 7, kind: input, shape index: {}]   ;;  %s1427_s8 = inlined_call_operand.hbm [shape: f32[2,256], index: 8, kind: output, shape index: {}]  }
   0x1   :  { %14 = vsyncpa [#allocation4], 0  ;;  %s23_s29 = sshll.u32 %s1421_s2, 4  ;;  %s1207_s30 = smov [#allocation2]   ;;  %s24_s29 = int_to_ptr.hbm [resolvable:$true] %s23_s29 }
   0x2   :  { %s25_s9 = sshll.u32 %s1207_s30, 4  ;;  %s1208_s10 = smov 128   ;;  %s26_s9 = int_to_ptr.vmem [resolvable:$true] %s25_s9 }
   0x3   :  { %s1209_s11 = smov 8  }
   0x4   :  { %31 = dma.hbm_to_vmem [thread:$0]  %s24_s29, 8192, %s26_s9, [#allocation3], %s1208_s10, %s1208_s10, %s1209_s11  }
   0x5   :  { %1203 = dma.done.wait [#allocation3], 8192  }
   0x6   :  { %1204 = vsyncadd [#allocation3], 4294959104  ;;  %v1266_v0 = vld [vmem:[%s1419_s0] sm:$0xf]  ;;  %v871_v1 = vld [vmem:[#allocation2 + $0x70] sm:$0xf] }
   0x7   :  { %v47_v2 = vmul.f32 %v1266_v0, %v1266_v0  ;;  %v1088_v3 = vld [vmem:[#allocation2 + $0x74] sm:$0xf0]  ;;  %v935_v4 = vld [vmem:[#allocation2 + $0xf0] sm:$0xf]  ;;  %v1087_v7 = vld [vmem:[#allocation2 + $0x74] sm:$0xf] }
   0x8   :  { %v872_v5 = vor.u32 %v1088_v3, %v871_v1  ;;  %v1104_v6 = vld [vmem:[#allocation2 + $0xf4] sm:$0xf0]  ;;  %v873_v8 = vld [vmem:[#allocation2 + $0x78] sm:$0xf0]  ;;  %v1103_v11 = vld [vmem:[#allocation2 + $0xf4] sm:$0xf] }
   0x9   :  { %49 = vst [vmem:[#allocation1] ss:$4 sm:$0xff] %v47_v2  ;;  %v936_v9 = vor.u32 %v1104_v6, %v935_v4  ;;  %v876_v10 = vor.u32 %v1087_v7, %v873_v8  ;;  %v937_v12 = vld [vmem:[#allocation2 + $0xf8] sm:$0xf0]  ;;  %v863_v13 = vld [vmem:[#allocation2 + $0x60] sm:$0xf] }
   0xa   :  { %294 = vmatpush.bf16.msra.mxu0 %v872_v5  ;;  %v1086_v14 = vld [vmem:[#allocation2 + $0x64] sm:$0xf0]  ;;  %v940_v15 = vor.u32 %v1103_v11, %v937_v12  ;;  %v927_v17 = vld [vmem:[#allocation2 + $0xe0] sm:$0xf]  ;;  %v1085_v19 = vld [vmem:[#allocation2 + $0x64] sm:$0xf] }
   0xb   :  { %307 = vmatpush.bf16.msra.mxu1 %v936_v9  ;;  %320 = vmatpush.bf16.msra.mxu2 %v876_v10  ;;  %v864_v16 = vor.u32 %v1086_v14, %v863_v13  ;;  %v1102_v18 = vld [vmem:[#allocation2 + $0xe4] sm:$0xf0]  ;;  %v865_v21 = vld [vmem:[#allocation2 + $0x68] sm:$0xf0]  ;;  %v1101_v22 = vld [vmem:[#allocation2 + $0xe4] sm:$0xf] }
   0xc   :  { %v928_v20 = vor.u32 %v1102_v18, %v927_v17  ;;  %v929_v23 = vld [vmem:[#allocation2 + $0xe8] sm:$0xf0]  ;;  %333 = vmatpush.bf16.msra.mxu3 %v940_v15  ;;  %v868_v24 = vor.u32 %v1085_v19, %v865_v21  ;;  %vm54_vm0 = vcmask 1041408   ;;  %v855_v31 = vld [vmem:[#allocation2 + $0x50] sm:$0xf]  ;;  %v1210_v46 = vmov 256.0  }
   0xd   :  { %v932_v25 = vor.u32 %v1101_v22, %v929_v23  ;;  %v1084_v32 = vld [vmem:[#allocation2 + $0x54] sm:$0xf0]  ;;  %v919_v33 = vld [vmem:[#allocation2 + $0xd0] sm:$0xf]  ;;  %v1083_v36 = vld [vmem:[#allocation2 + $0x54] sm:$0xf]  ;;  %1145 = vrcp.f32 %v1210_v46 }
   0xe   :  { %295 = vmatpush.bf16.msra.mxu0 %v864_v16  ;;  %v856_v34 = vor.u32 %v1084_v32, %v855_v31  ;;  %v1100_v35 = vld [vmem:[#allocation2 + $0xd4] sm:$0xf0]  ;;  %v857_v37 = vld [vmem:[#allocation2 + $0x58] sm:$0xf0]  ;;  %v1099_v40 = vld [vmem:[#allocation2 + $0xd4] sm:$0xf] }
   0xf   :  { %308 = vmatpush.bf16.msra.mxu1 %v928_v20  ;;  %321 = vmatpush.bf16.msra.mxu2 %v868_v24  ;;  %v920_v38 = vor.u32 %v1100_v35, %v919_v33  ;;  %v860_v39 = vor.u32 %v1083_v36, %v857_v37  ;;  %v921_v41 = vld [vmem:[#allocation2 + $0xd8] sm:$0xf0]  ;;  %v847_v43 = vld [vmem:[#allocation2 + $0x40] sm:$0xf]  ;;  %v1082_v44 = vld [vmem:[#allocation2 + $0x44] sm:$0xf0] }
  0x10   :  { %v50_v26 = vld.sshfl [vmem:[#allocation1] sm:$0xff pattern:$0x73625140]  ;;  %v51_v27 = vld.sshfl [vmem:[#allocation1 + $0x8] sm:$0xff pattern:$0x73625140]  ;;  %334 = vmatpush.bf16.msra.mxu3 %v932_v25  ;;  %v924_v42 = vor.u32 %v1099_v40, %v921_v41  ;;  %v848_v47 = vor.u32 %v1082_v44, %v847_v43 }
  0x11   :  { %v55_v28 = vsel %vm54_vm0, %v50_v26, 0.0  ;;  %v56_v29 = vsel %vm54_vm0, %v51_v27, 0.0  ;;  %v911_v45 = vld [vmem:[#allocation2 + $0xc0] sm:$0xf]  ;;  %v1098_v48 = vld [vmem:[#allocation2 + $0xc4] sm:$0xf0] }
  0x12   :  { %v57_v30 = vadd.f32 %v56_v29, %v55_v28  ;;  %296 = vmatpush.bf16.msra.mxu0 %v856_v34  ;;  %v1081_v49 = vld [vmem:[#allocation2 + $0x44] sm:$0xf]  ;;  %v849_v50 = vld [vmem:[#allocation2 + $0x48] sm:$0xf0]  ;;  %v912_v51 = vor.u32 %v1098_v48, %v911_v45  ;;  %v839_v56 = vld [vmem:[#allocation2 + $0x30] sm:$0xf] }
  0x13   :  { %309 = vmatpush.bf16.msra.mxu1 %v920_v38  ;;  %322 = vmatpush.bf16.msra.mxu2 %v860_v39  ;;  %v852_v52 = vor.u32 %v1081_v49, %v849_v50  ;;  %v1097_v53 = vld [vmem:[#allocation2 + $0xc4] sm:$0xf]  ;;  %v913_v54 = vld [vmem:[#allocation2 + $0xc8] sm:$0xf0]  ;;  %v1080_v57 = vld [vmem:[#allocation2 + $0x34] sm:$0xf0]  ;;  %v1272_v4 = vpop.eup %1145 }
  0x14   :  { %58 = vadd.xlane.f32.xlu0 %v57_v30  ;;  %335 = vmatpush.bf16.msra.mxu3 %v924_v42  ;;  %v916_v55 = vor.u32 %v1097_v53, %v913_v54  ;;  %v903_v58 = vld [vmem:[#allocation2 + $0xb0] sm:$0xf]  ;;  %v840_v59 = vor.u32 %v1080_v57, %v839_v56  ;;  %v1096_v60 = vld [vmem:[#allocation2 + $0xb4] sm:$0xf0]  ;;  %v1079_v61 = vld [vmem:[#allocation2 + $0x34] sm:$0xf]  ;;  %vm65_vm1 = vweird.f32 %v1272_v4 }
  0x15   :  { %v841_v62 = vld [vmem:[#allocation2 + $0x38] sm:$0xf0]  ;;  %v904_v63 = vor.u32 %v1096_v60, %v903_v58  ;;  %v1095_v2 = vld [vmem:[#allocation2 + $0xb4] sm:$0xf]  ;;  %v831_v6 = vld [vmem:[#allocation2 + $0x20] sm:$0xf] }
  0x16   :  { %297 = vmatpush.bf16.msra.mxu0 %v848_v47  ;;  %v844_v1 = vor.u32 %v1079_v61, %v841_v62  ;;  %v905_v3 = vld [vmem:[#allocation2 + $0xb8] sm:$0xf0]  ;;  %v1078_v7 = vld [vmem:[#allocation2 + $0x24] sm:$0xf0]  ;;  %v895_v8 = vld [vmem:[#allocation2 + $0xa0] sm:$0xf] }
  0x17   :  { %310 = vmatpush.bf16.msra.mxu1 %v912_v51  ;;  %323 = vmatpush.bf16.msra.mxu2 %v852_v52  ;;  %v908_v5 = vor.u32 %v1095_v2, %v905_v3  ;;  %v832_v9 = vor.u32 %v1078_v7, %v831_v6  ;;  %v1094_v10 = vld [vmem:[#allocation2 + $0xa4] sm:$0xf0]  ;;  %v1077_v11 = vld [vmem:[#allocation2 + $0x24] sm:$0xf]  ;;  %v833_v12 = vld [vmem:[#allocation2 + $0x28] sm:$0xf0] }
  0x18   :  { %336 = vmatpush.bf16.msra.mxu3 %v916_v55  ;;  %v61_v13 = vmul.f32 256.0, %v1272_v4  ;;  %v896_v14 = vor.u32 %v1094_v10, %v895_v8  ;;  %v836_v15 = vor.u32 %v1077_v11, %v833_v12  ;;  %v1093_v16 = vld [vmem:[#allocation2 + $0xa4] sm:$0xf]  ;;  %v897_v17 = vld [vmem:[#allocation2 + $0xa8] sm:$0xf0]  ;;  %s1212_s15 = smov 127  }
  0x19   :  { %v900_v18 = vor.u32 %v1093_v16, %v897_v17  ;;  %v823_v19 = vld [vmem:[#allocation2 + $0x10] sm:$0xf]  ;;  %v1076_v20 = vld [vmem:[#allocation2 + $0x14] sm:$0xf0]  ;;  %v1075_v24 = vld [vmem:[#allocation2 + $0x14] sm:$0xf] }
  0x1a   :  { %298 = vmatpush.bf16.msra.mxu0 %v840_v59  ;;  %v887_v21 = vld [vmem:[#allocation2 + $0x90] sm:$0xf]  ;;  %v824_v22 = vor.u32 %v1076_v20, %v823_v19  ;;  %v1092_v23 = vld [vmem:[#allocation2 + $0x94] sm:$0xf0]  ;;  %v825_v25 = vld [vmem:[#allocation2 + $0x18] sm:$0xf0] }
  0x1b   :  { %311 = vmatpush.bf16.msra.mxu1 %v904_v63  ;;  %324 = vmatpush.bf16.msra.mxu2 %v844_v1  ;;  %v62_v26 = vsub.f32 1.0, %v61_v13  ;;  %v888_v27 = vor.u32 %v1092_v23, %v887_v21  ;;  %v828_v28 = vor.u32 %v1075_v24, %v825_v25  ;;  %v1091_v29 = vld [vmem:[#allocation2 + $0x94] sm:$0xf]  ;;  %v889_v30 = vld [vmem:[#allocation2 + $0x98] sm:$0xf0]  ;;  %vm743_vm7 = vcmask 1043456  }
  0x1c   :  { %337 = vmatpush.bf16.msra.mxu3 %v908_v5  ;;  %v892_v31 = vor.u32 %v1091_v29, %v889_v30  ;;  %v815_v32 = vld [vmem:[#allocation2] sm:$0xf]  ;;  %v1074_v33 = vld [vmem:[#allocation2 + $0x4] sm:$0xf0]  ;;  %v1073_v37 = vld [vmem:[#allocation2 + $0x4] sm:$0xf] }
  0x1d   :  { %v879_v34 = vld [vmem:[#allocation2 + $0x80] sm:$0xf]  ;;  %v816_v35 = vor.u32 %v1074_v33, %v815_v32  ;;  %v1090_v36 = vld [vmem:[#allocation2 + $0x84] sm:$0xf0]  ;;  %v817_v38 = vld [vmem:[#allocation2 + $0x8] sm:$0xf0]  ;;  %v63_v39 = vmul.f32 %v1272_v4, %v62_v26 }
  0x1e   :  { %299 = vmatpush.bf16.msra.mxu0 %v832_v9  ;;  %v880_v40 = vor.u32 %v1090_v36, %v879_v34  ;;  %v820_v41 = vor.u32 %v1073_v37, %v817_v38  ;;  %v1089_v42 = vld [vmem:[#allocation2 + $0x84] sm:$0xf]  ;;  %v881_v43 = vld [vmem:[#allocation2 + $0x88] sm:$0xf0]  ;;  %v999_v44 = vld [vmem:[#allocation2 + $0x170] sm:$0xf] }
  0x1f   :  { %312 = vmatpush.bf16.msra.mxu1 %v896_v14  ;;  %325 = vmatpush.bf16.msra.mxu2 %v836_v15  ;;  %v884_v45 = vor.u32 %v1089_v42, %v881_v43  ;;  %v1120_v46 = vld [vmem:[#allocation2 + $0x174] sm:$0xf0]  ;;  %v1063_v47 = vld [vmem:[#allocation2 + $0x1f0] sm:$0xf]  ;;  %v1119_v51 = vld [vmem:[#allocation2 + $0x174] sm:$0xf]  ;;  %v64_v58 = vadd.f32 %v1272_v4, %v63_v39 }
  0x20   :  { %338 = vmatpush.bf16.msra.mxu3 %v900_v18  ;;  %v1136_v48 = vld [vmem:[#allocation2 + $0x1f4] sm:$0xf0]  ;;  %v1000_v49 = vor.u32 %v1120_v46, %v999_v44  ;;  %v1001_v52 = vld [vmem:[#allocation2 + $0x178] sm:$0xf0]  ;;  %v1135_v53 = vld [vmem:[#allocation2 + $0x1f4] sm:$0xf] }
  0x21   :  { %v1064_v50 = vor.u32 %v1136_v48, %v1063_v47  ;;  %v1004_v54 = vor.u32 %v1119_v51, %v1001_v52  ;;  %v1065_v55 = vld [vmem:[#allocation2 + $0x1f8] sm:$0xf0]  ;;  %v991_v56 = vld [vmem:[#allocation2 + $0x160] sm:$0xf]  ;;  %v1118_v57 = vld [vmem:[#allocation2 + $0x164] sm:$0xf0]  ;;  %v66_v11 = vsel %vm65_vm1, %v1272_v4, %v64_v58 }
  0x22   :  { %300 = vmatpush.bf16.msra.mxu0 %v824_v22  ;;  %v1068_v59 = vor.u32 %v1135_v53, %v1065_v55  ;;  %v992_v60 = vor.u32 %v1118_v57, %v991_v56  ;;  %v1055_v61 = vld [vmem:[#allocation2 + $0x1e0] sm:$0xf]  ;;  %v1134_v62 = vld [vmem:[#allocation2 + $0x1e4] sm:$0xf0]  ;;  %v1117_v63 = vld [vmem:[#allocation2 + $0x164] sm:$0xf] }
  0x23   :  { %313 = vmatpush.bf16.msra.mxu1 %v888_v27  ;;  %326 = vmatpush.bf16.msra.mxu2 %v828_v28  ;;  %v1056_v1 = vor.u32 %v1134_v62, %v1055_v61  ;;  %v993_v2 = vld [vmem:[#allocation2 + $0x168] sm:$0xf0]  ;;  %v1133_v3 = vld [vmem:[#allocation2 + $0x1e4] sm:$0xf]  ;;  %v983_v8 = vld [vmem:[#allocation2 + $0x150] sm:$0xf] }
  0x24   :  { %339 = vmatpush.bf16.msra.mxu3 %v892_v31  ;;  %v1057_v5 = vld [vmem:[#allocation2 + $0x1e8] sm:$0xf0]  ;;  %v996_v6 = vor.u32 %v1117_v63, %v993_v2  ;;  %v1116_v9 = vld [vmem:[#allocation2 + $0x154] sm:$0xf0]  ;;  %v1047_v10 = vld [vmem:[#allocation2 + $0x1d0] sm:$0xf] }
  0x25   :  { %v1060_v7 = vor.u32 %v1133_v3, %v1057_v5  ;;  %v984_v12 = vor.u32 %v1116_v9, %v983_v8  ;;  %v1132_v13 = vld [vmem:[#allocation2 + $0x1d4] sm:$0xf0]  ;;  %v1115_v14 = vld [vmem:[#allocation2 + $0x154] sm:$0xf]  ;;  %v985_v15 = vld [vmem:[#allocation2 + $0x158] sm:$0xf0] }
  0x26   :  { %301 = vmatpush.bf16.msra.mxu0 %v816_v35  ;;  %v1048_v16 = vor.u32 %v1132_v13, %v1047_v10  ;;  %v988_v17 = vor.u32 %v1115_v14, %v985_v15  ;;  %v1131_v18 = vld [vmem:[#allocation2 + $0x1d4] sm:$0xf]  ;;  %v1049_v19 = vld [vmem:[#allocation2 + $0x1d8] sm:$0xf0]  ;;  %v975_v20 = vld [vmem:[#allocation2 + $0x140] sm:$0xf] }
  0x27   :  { %314 = vmatpush.bf16.msra.mxu1 %v880_v40  ;;  %327 = vmatpush.bf16.msra.mxu2 %v820_v41  ;;  %v1052_v22 = vor.u32 %v1131_v18, %v1049_v19  ;;  %v1114_v23 = vld [vmem:[#allocation2 + $0x144] sm:$0xf0]  ;;  %v1039_v24 = vld [vmem:[#allocation2 + $0x1c0] sm:$0xf]  ;;  %v1113_v4 = vld [vmem:[#allocation2 + $0x144] sm:$0xf] }
  0x28   :  { %340 = vmatpush.bf16.msra.mxu3 %v884_v45  ;;  %v1130_v25 = vld [vmem:[#allocation2 + $0x1c4] sm:$0xf0]  ;;  %v977_v27 = vld [vmem:[#allocation2 + $0x148] sm:$0xf0]  ;;  %v1129_v28 = vld [vmem:[#allocation2 + $0x1c4] sm:$0xf]  ;;  %v976_v29 = vor.u32 %v1114_v23, %v975_v20 }
  0x29   :  { %v1040_v30 = vor.u32 %v1130_v25, %v1039_v24  ;;  %v1041_v31 = vld [vmem:[#allocation2 + $0x1c8] sm:$0xf0]  ;;  %v980_v33 = vor.u32 %v1113_v4, %v977_v27  ;;  %v967_v35 = vld [vmem:[#allocation2 + $0x130] sm:$0xf]  ;;  %v1112_v36 = vld [vmem:[#allocation2 + $0x134] sm:$0xf0] }
  0x2a   :  { %539 = vmatpush.bf16.msrb.mxu0 %v1000_v49  ;;  %v1044_v34 = vor.u32 %v1129_v28, %v1041_v31  ;;  %v1031_v37 = vld [vmem:[#allocation2 + $0x1b0] sm:$0xf]  ;;  %v968_v38 = vor.u32 %v1112_v36, %v967_v35  ;;  %v1128_v39 = vld [vmem:[#allocation2 + $0x1b4] sm:$0xf0]  ;;  %v1111_v40 = vld [vmem:[#allocation2 + $0x134] sm:$0xf] }
  0x2b   :  { %552 = vmatpush.bf16.msrb.mxu1 %v1064_v50  ;;  %565 = vmatpush.bf16.msrb.mxu2 %v1004_v54  ;;  %v1032_v41 = vor.u32 %v1128_v39, %v1031_v37  ;;  %v969_v42 = vld [vmem:[#allocation2 + $0x138] sm:$0xf0]  ;;  %v1127_v43 = vld [vmem:[#allocation2 + $0x1b4] sm:$0xf]  ;;  %v959_v47 = vld [vmem:[#allocation2 + $0x120] sm:$0xf] }
  0x2c   :  { %578 = vmatpush.bf16.msrb.mxu3 %v1068_v59  ;;  %v1033_v44 = vld [vmem:[#allocation2 + $0x1b8] sm:$0xf0]  ;;  %v972_v45 = vor.u32 %v1111_v40, %v969_v42  ;;  %v1110_v48 = vld [vmem:[#allocation2 + $0x124] sm:$0xf0]  ;;  %v1023_v49 = vld [vmem:[#allocation2 + $0x1a0] sm:$0xf] }
  0x2d   :  { %v1036_v46 = vor.u32 %v1127_v43, %v1033_v44  ;;  %v960_v50 = vor.u32 %v1110_v48, %v959_v47  ;;  %v1126_v51 = vld [vmem:[#allocation2 + $0x1a4] sm:$0xf0]  ;;  %v1109_v52 = vld [vmem:[#allocation2 + $0x124] sm:$0xf]  ;;  %v961_v53 = vld [vmem:[#allocation2 + $0x128] sm:$0xf0] }
  0x2e   :  { %540 = vmatpush.bf16.msrb.mxu0 %v992_v60  ;;  %v1024_v55 = vor.u32 %v1126_v51, %v1023_v49  ;;  %v964_v56 = vor.u32 %v1109_v52, %v961_v53  ;;  %v1125_v57 = vld [vmem:[#allocation2 + $0x1a4] sm:$0xf]  ;;  %v1025_v58 = vld [vmem:[#allocation2 + $0x1a8] sm:$0xf0]  ;;  %v951_v59 = vld [vmem:[#allocation2 + $0x110] sm:$0xf] }
  0x2f   :  { %553 = vmatpush.bf16.msrb.mxu1 %v1056_v1  ;;  %566 = vmatpush.bf16.msrb.mxu2 %v996_v6  ;;  %v1028_v61 = vor.u32 %v1125_v57, %v1025_v58  ;;  %v1108_v62 = vld [vmem:[#allocation2 + $0x114] sm:$0xf0]  ;;  %v1015_v63 = vld [vmem:[#allocation2 + $0x190] sm:$0xf]  ;;  %v1107_v3 = vld [vmem:[#allocation2 + $0x114] sm:$0xf] }
  0x30   :  { %579 = vmatpush.bf16.msrb.mxu3 %v1060_v7  ;;  %v1124_v1 = vld [vmem:[#allocation2 + $0x194] sm:$0xf0]  ;;  %v953_v5 = vld [vmem:[#allocation2 + $0x118] sm:$0xf0]  ;;  %v952_v7 = vor.u32 %v1108_v62, %v951_v59  ;;  %v1123_v9 = vld [vmem:[#allocation2 + $0x194] sm:$0xf] }
  0x31   :  { %v86_v2 = vld [vmem:[%s1420_s1] sm:$0x3]  ;;  %v1016_v8 = vor.u32 %v1124_v1, %v1015_v63  ;;  %v1017_v10 = vld [vmem:[#allocation2 + $0x198] sm:$0xf0]  ;;  %v956_v14 = vor.u32 %v1107_v3, %v953_v5  ;;  %v1106_v15 = vld [vmem:[#allocation2 + $0x104] sm:$0xf0] }
  0x32   :  { %541 = vmatpush.bf16.msrb.mxu0 %v984_v12  ;;  %v1211_v12 = vmov 269488144   ;;  %v89_v18 = vperm.slane %v86_v2, 1  ;;  %v1020_v20 = vor.u32 %v1123_v9, %v1017_v10  ;;  %v1121_v23 = vld [vmem:[#allocation2 + $0x184] sm:$0xf]  ;;  %v88_v27 = vperm.slane %v86_v2, 0 }
  0x33   :  { %554 = vmatpush.bf16.msrb.mxu1 %v1048_v16  ;;  %567 = vmatpush.bf16.msrb.mxu2 %v988_v17  ;;  %v81_v13 = vunpack.c.l.s4 %v1211_v12  ;;  %v1007_v16 = vld [vmem:[#allocation2 + $0x180] sm:$0xf]  ;;  %v1122_v17 = vld [vmem:[#allocation2 + $0x184] sm:$0xf0]  ;;  %v1009_v24 = vld [vmem:[#allocation2 + $0x188] sm:$0xf0] }
  0x34   :  { %580 = vmatpush.bf16.msrb.mxu3 %v1052_v22  ;;  %v945_v22 = vld [vmem:[#allocation2 + $0x108] sm:$0xf0]  ;;  %v1008_v4 = vor.u32 %v1122_v17, %v1007_v16  ;;  %v734_v39 = vld [vmem:[%s1426_s7] sm:$0xff]  ;;  %s1213_s7 = smov 1   ;;  %v652_v62 = vld [vmem:[%s1425_s6 + $0x78] sm:$0xff]  ;;  %vm739_vm12 = vcmask 31744  }
  0x35   :  { %v82_v28 = vunpack.c.0.s8 %v81_v13  ;;  %v668_v63 = vld [vmem:[%s1425_s6 + $0xf8] sm:$0xff]  ;;  %v651_v1 = vld [vmem:[%s1425_s6 + $0x70] sm:$0xff]  ;;  %v650_v3 = vld [vmem:[%s1425_s6 + $0x68] sm:$0xff]  ;;  %s803_s12 = sshll.u32 %s1427_s8, 4  ;;  %s804_s12 = int_to_ptr.hbm [resolvable:$true] %s803_s12 }
  0x36   :  { %542 = vmatpush.bf16.msrb.mxu0 %v976_v29  ;;  %v667_v2 = vld [vmem:[%s1425_s6 + $0xf0] sm:$0xff]  ;;  %v666_v5 = vld [vmem:[%s1425_s6 + $0xe8] sm:$0xff]  ;;  %v664_v9 = vld [vmem:[%s1425_s6 + $0xd8] sm:$0xff] }
  0x37   :  { %555 = vmatpush.bf16.msrb.mxu1 %v1040_v30  ;;  %568 = vmatpush.bf16.msrb.mxu2 %v980_v33  ;;  %v90_v30 = vrot.slane %v89_v18, 6  ;;  %v1012_v33 = vor.u32 %v1121_v23, %v1009_v24  ;;  %v647_v10 = vld [vmem:[%s1425_s6 + $0x50] sm:$0xff]  ;;  %v646_v12 = vld [vmem:[%s1425_s6 + $0x48] sm:$0xff]  ;;  %v644_v16 = vld [vmem:[%s1425_s6 + $0x38] sm:$0xff] }
  0x38   :  { %581 = vmatpush.bf16.msrb.mxu3 %v1044_v34  ;;  %v662_v13 = vld [vmem:[%s1425_s6 + $0xc8] sm:$0xff]  ;;  %v660_v17 = vld [vmem:[%s1425_s6 + $0xb8] sm:$0xff]  ;;  %v643_v18 = vld [vmem:[%s1425_s6 + $0x30] sm:$0xff] }
  0x39   :  { %v91_v36 = vsel %vm54_vm0, %v88_v27, %v90_v30  ;;  %v657_v23 = vld [vmem:[%s1425_s6 + $0xa0] sm:$0xff]  ;;  %v640_v24 = vld [vmem:[%s1425_s6 + $0x18] sm:$0xff]  ;;  %v638_v27 = vld [vmem:[%s1425_s6 + $0x8] sm:$0xff] }
  0x3a   :  { %543 = vmatpush.bf16.msrb.mxu0 %v968_v38  ;;  %v653_v30 = vld [vmem:[%s1425_s6 + $0x80] sm:$0xff] }
  0x3b   :  { %556 = vmatpush.bf16.msrb.mxu1 %v1032_v41  ;;  %569 = vmatpush.bf16.msrb.mxu2 %v972_v45 }
  0x3c   :  { %582 = vmatpush.bf16.msrb.mxu3 %v1036_v46 }
  0x3e   :  { %544 = vmatpush.bf16.msrb.mxu0 %v960_v50 }
  0x3f   :  { %557 = vmatpush.bf16.msrb.mxu1 %v1024_v55  ;;  %570 = vmatpush.bf16.msrb.mxu2 %v964_v56 }
  0x40   :  { %583 = vmatpush.bf16.msrb.mxu3 %v1028_v61 }
  0x42   :  { %545 = vmatpush.bf16.msrb.mxu0 %v952_v7  ;;  %v665_v7 = vld [vmem:[%s1425_s6 + $0xe0] sm:$0xff] }
  0x43   :  { %558 = vmatpush.bf16.msrb.mxu1 %v1016_v8  ;;  %571 = vmatpush.bf16.msrb.mxu2 %v956_v14  ;;  %v648_v8 = vld [vmem:[%s1425_s6 + $0x58] sm:$0xff]  ;;  %v645_v14 = vld [vmem:[%s1425_s6 + $0x40] sm:$0xff] }
  0x44   :  { %584 = vmatpush.bf16.msrb.mxu3 %v1020_v20  ;;  %v642_v20 = vld [vmem:[%s1425_s6 + $0x28] sm:$0xff] }
  0x47   :  { %559 = vmatpush.bf16.msrb.mxu1 %v1008_v4  ;;  %v655_v4 = vld [vmem:[%s1425_s6 + $0x90] sm:$0xff] }
  0x48   :  { %585 = vmatpush.bf16.msrb.mxu3 %v1012_v33 }
  0x87   :  { %v59_v21 = vpop.xlane.xlu0 %58 }
  0x88   :  { %v67_v26 = vmul.f32 %v66_v11, %v59_v21  ;;  %v943_v11 = vld [vmem:[#allocation2 + $0x100] sm:$0xf]  ;;  %v1105_v21 = vld [vmem:[#allocation2 + $0x104] sm:$0xf] }
  0x89   :  { %v948_v29 = vor.u32 %v1105_v21, %v945_v22  ;;  %v658_v21 = vld [vmem:[%s1425_s6 + $0xa8] sm:$0xff]  ;;  %v641_v22 = vld [vmem:[%s1425_s6 + $0x20] sm:$0xff] }
  0x8a   :  { %v1279_v32 = vadd.f32 1e-05, %v67_v26  ;;  %v944_v26 = vor.u32 %v1106_v15, %v943_v11  ;;  %v663_v11 = vld [vmem:[%s1425_s6 + $0xd0] sm:$0xff]  ;;  %v661_v15 = vld [vmem:[%s1425_s6 + $0xc0] sm:$0xff] }
  0x8b   :  { %572 = vmatpush.bf16.msrb.mxu2 %v948_v29  ;;  %v637_v29 = vld [vmem:[%s1425_s6] sm:$0xff] }
  0x8c   :  { %1147 = vrsqrt.f32 %v1279_v32  ;;  %vm75_vm3 = vweird.f32 %v1279_v32  ;;  %546 = vmatpush.bf16.msrb.mxu0 %v944_v26  ;;  %v639_v26 = vld [vmem:[%s1425_s6 + $0x10] sm:$0xff] }
  0x92   :  { %v1148_v54 = vpop.eup %1147 }
  0x93   :  { %v70_v60 = vmul.f32 %v1148_v54, %v1279_v32  ;;  %vm76_vm2 = vweird.f32 %v1148_v54 }
  0x94   :  { %vm77_vm4 = vmor %vm75_vm3, %vm76_vm2 }
  0x95   :  { %v71_v6 = vmul.f32 %v1148_v54, %v70_v60 }
  0x97   :  { %v72_v19 = vmul.f32 0.5, %v71_v6  ;;  %v649_v6 = vld [vmem:[%s1425_s6 + $0x60] sm:$0xff] }
  0x99   :  { %v73_v25 = vsub.f32 1.5, %v72_v19  ;;  %v659_v19 = vld [vmem:[%s1425_s6 + $0xb0] sm:$0xff] }
  0x9b   :  { %v74_v31 = vmul.f32 %v1148_v54, %v73_v25  ;;  %v656_v25 = vld [vmem:[%s1425_s6 + $0x98] sm:$0xff] }
  0x9d   :  { %v78_v34 = vsel %vm77_vm4, %v1148_v54, %v74_v31  ;;  %v603_v31 = vlaneseq }
  0x9e   :  { %v83_v35 = vperm.slane %v78_v34, %v82_v28  ;;  %v654_v28 = vld [vmem:[%s1425_s6 + $0x88] sm:$0xff]  ;;  %v608_v34 = vld [vmem:[%s1423_s4] sm:$0x3] }
  0x9f   :  { %v604_v33 = vand.u32 127, %v603_v31 }
  0xa0   :  { %v85_v37 = vmul.f32 %v83_v35, %v1266_v0 }
  0xa1   :  { %vm605_vm5 = vcmp.lt.s32.totalorder %v604_v33, 127  ;;  %vm622_vm6 = vcmp.lt.s32.totalorder %v604_v33, 1 }
  0xa2   :  { %v93_v38 = vmul.f32 %v91_v36, %v85_v37  ;;  %v591_v36 = vld [vmem:[%s1422_s3] sm:$0x3]  ;;  %s1214_s3 = smov [#allocation5]  }
  0xa3   :  { %s801_s4 = sshll.u32 %s1214_s3, 4  ;;  %s802_s4 = int_to_ptr.vmem [resolvable:$true] %s801_s4 }
  0xa4   :  { %95 = vst [vmem:[#allocation1] ss:$4 sm:$0xff] %v93_v38  ;;  %v610_v38 = vperm.slane %v608_v34, 0 }
  0xab   :  { %v96_v32 = vld.sshfl [vmem:[#allocation1] sm:$0xff pattern:$0x73625140]  ;;  %v97_v40 = vld.sshfl [vmem:[#allocation1 + $0x8] sm:$0xff pattern:$0x73625140] }
  0xac   :  { %v100_v41 = vpack.c.bf16 %v96_v32, %v96_v32  ;;  %v101_v42 = vpack.c.bf16 %v97_v40, %v97_v40  ;;  %736 = vst [vmem:[#allocation1] ss:$2 sm:$0xff] %v734_v39  ;;  %v611_v39 = vperm.slane %v608_v34, 1 }
  0xae   :  { %302 = vmatmul.bf16.vlgmr.msra.gmra.mxu0 %v100_v41  ;;  %315 = vmatmul.bf16.vlgmr.msra.gmra.mxu1 %v101_v42 }
  0xaf   :  { %328 = vmatmul.bf16.vlgmr.msra.gmra.mxu2 %v100_v41  ;;  %341 = vmatmul.bf16.vlgmr.msra.gmra.mxu3 %v101_v42 }
  0xb0   :  { %669 = vmatpush.msra.mxu0 %v652_v62  ;;  %689 = vmatpush.msra.mxu1 %v668_v63 }
  0xb2   :  { %670 = vmatpush.msra.mxu0 %v651_v1  ;;  %690 = vmatpush.msra.mxu1 %v667_v2 }
  0xb4   :  { %671 = vmatpush.msra.mxu0 %v650_v3  ;;  %691 = vmatpush.msra.mxu1 %v666_v5 }
  0xb6   :  { %672 = vmatpush.msra.mxu0 %v649_v6  ;;  %692 = vmatpush.msra.mxu1 %v665_v7 }
  0xb8   :  { %673 = vmatpush.msra.mxu0 %v648_v8  ;;  %693 = vmatpush.msra.mxu1 %v664_v9  ;;  %v738_v9 = vld.sshfl [vmem:[#allocation1 + $0x8] sm:$0xff pattern:$0x75316420] }
  0xb9   :  { %1071 = vmatpush.msk.msra.mxu3 %vm743_vm7, %v738_v9 }
  0xba   :  { %674 = vmatpush.msra.mxu0 %v647_v10  ;;  %694 = vmatpush.msra.mxu1 %v663_v11 }
  0xbc   :  { %675 = vmatpush.msra.mxu0 %v646_v12  ;;  %695 = vmatpush.msra.mxu1 %v662_v13  ;;  %v737_v12 = vld.sshfl [vmem:[#allocation1] sm:$0xff pattern:$0x75316420] }
  0xbd   :  { %1069 = vmatpush.msk.msra.mxu2 %vm743_vm7, %v737_v12 }
  0xbe   :  { %547 = vmatmul.bf16.vlgmr.msrb.gmra.mxu0 %v100_v41  ;;  %560 = vmatmul.bf16.vlgmr.msrb.gmra.mxu1 %v101_v42 }
  0xbf   :  { %573 = vmatmul.bf16.vlgmr.msrb.gmra.mxu2 %v100_v41  ;;  %586 = vmatmul.bf16.vlgmr.msrb.gmra.mxu3 %v101_v42  ;;  %v625_v41 = vld [vmem:[%s1424_s5] sm:$0x3]  ;;  %v593_v42 = vperm.slane %v591_v36, 0 }
  0xc0   :  { %676 = vmatpush.msra.mxu0 %v645_v14  ;;  %696 = vmatpush.msra.mxu1 %v661_v15 }
  0xc2   :  { %677 = vmatpush.msra.mxu0 %v644_v16  ;;  %697 = vmatpush.msra.mxu1 %v660_v17 }
  0xc4   :  { %678 = vmatpush.msra.mxu0 %v643_v18  ;;  %698 = vmatpush.msra.mxu1 %v659_v19 }
  0xc6   :  { %679 = vmatpush.msra.mxu0 %v642_v20  ;;  %699 = vmatpush.msra.mxu1 %v658_v21 }
  0xc8   :  { %680 = vmatpush.msra.mxu0 %v641_v22  ;;  %700 = vmatpush.msra.mxu1 %v657_v23 }
  0xca   :  { %681 = vmatpush.msra.mxu0 %v640_v24  ;;  %701 = vmatpush.msra.mxu1 %v656_v25 }
  0xcc   :  { %682 = vmatpush.msra.mxu0 %v639_v26  ;;  %702 = vmatpush.msra.mxu1 %v655_v4 }
  0xce   :  { %683 = vmatpush.msra.mxu0 %v638_v27  ;;  %703 = vmatpush.msra.mxu1 %v654_v28 }
  0xd0   :  { %684 = vmatpush.msra.mxu0 %v637_v29  ;;  %704 = vmatpush.msra.mxu1 %v653_v30 }
 0x12b   :  { %v303_v0 = vpop.f32.mrf.mxu0  ;;  %v316_v43 = vpop.f32.mrf.mxu1 }
 0x12c   :  { %v1292_v44 = vadd.f32 %v316_v43, %v303_v0  ;;  %v594_v0 = vperm.slane %v591_v36, 1 }
 0x12e   :  { %599 = vrot.lane.b32.xlu0 %v1292_v44, %s1212_s15 }
 0x132   :  { %v329_v45 = vpop.f32.mrf.mxu2  ;;  %v342_v46 = vpop.f32.mrf.mxu3 }
 0x133   :  { %v1295_v47 = vadd.f32 %v342_v46, %v329_v45  ;;  %v305_v48 = vpop.f32.mrf.mxu0  ;;  %v318_v49 = vpop.f32.mrf.mxu1  ;;  %v627_v46 = vperm.slane %v625_v41, 0 }
 0x134   :  { %v628_v48 = vperm.slane %v625_v41, 1  ;;  %v597_v49 = vmul.f32 %v593_v42, %v1292_v44 }
 0x135   :  { %620 = vrot.lane.b32.xlu2 %v1295_v47, %s1213_s7  ;;  %601 = vrot.lane.b32.xlu1 %v1295_v47, %s1212_s15 }
 0x13a   :  { %v331_v50 = vpop.f32.mrf.mxu2  ;;  %v344_v51 = vpop.f32.mrf.mxu3 }
 0x13b   :  { %v548_v52 = vpop.f32.mrf.mxu0  ;;  %v561_v53 = vpop.f32.mrf.mxu1  ;;  %v598_v50 = vmul.f32 %v594_v0, %v1295_v47 }
 0x13c   :  { %v1299_v54 = vadd.f32 %v561_v53, %v548_v52 }
 0x13d   :  { %618 = vrot.lane.b32.xlu1 %v1292_v44, %s1213_s7 }
 0x142   :  { %v574_v55 = vpop.f32.mrf.mxu2  ;;  %v587_v56 = vpop.f32.mrf.mxu3 }
 0x143   :  { %v1302_v57 = vadd.f32 %v587_v56, %v574_v55  ;;  %v550_v58 = vpop.f32.mrf.mxu0  ;;  %v563_v59 = vpop.f32.mrf.mxu1 }
 0x14a   :  { %v576_v60 = vpop.f32.mrf.mxu2  ;;  %v589_v61 = vpop.f32.mrf.mxu3 }
 0x18f   :  { %v621_v51 = vpop.permute.xlu2 %620 }
 0x1a0   :  { %v600_v37 = vpop.permute.xlu0 %599 }
 0x1a7   :  { %v602_v35 = vpop.permute.xlu1 %601 }
 0x1a8   :  { %v606_v32 = vsel %vm605_vm5, %v600_v37, %v602_v35  ;;  %v607_v40 = vsel %vm605_vm5, %v602_v35, %v600_v37 }
 0x1a9   :  { %v614_v43 = vmul.f32 %v610_v38, %v606_v32  ;;  %v615_v45 = vmul.f32 %v611_v39, %v607_v40 }
 0x1ab   :  { %v616_v56 = vadd.f32 %v614_v43, %v597_v49  ;;  %v617_v58 = vadd.f32 %v615_v45, %v598_v50 }
 0x1af   :  { %v619_v52 = vpop.permute.xlu1 %618 }
 0x1b0   :  { %v623_v53 = vsel %vm622_vm6, %v619_v52, %v621_v51  ;;  %v624_v55 = vsel %vm622_vm6, %v621_v51, %v619_v52 }
 0x1b1   :  { %v631_v59 = vmul.f32 %v627_v46, %v624_v55  ;;  %v632_v60 = vmul.f32 %v628_v48, %v623_v53 }
 0x1b3   :  { %v633_v61 = vadd.f32 %v631_v59, %v616_v56  ;;  %v634_v62 = vadd.f32 %v632_v60, %v617_v58 }
 0x1b5   :  { %v635_v63 = vmul.f32 %v633_v61, %v1299_v54  ;;  %v636_v1 = vmul.f32 %v634_v62, %v1302_v57 }
 0x1b7   :  { %685 = vmatmul.f32.vlgmr.msra.gmra.mxu0 %v635_v63  ;;  %705 = vmatmul.f32.vlgmr.msra.gmra.mxu1 %v636_v1 }
 0x234   :  { %v686_v2 = vpop.f32.mrf.mxu0  ;;  %v706_v3 = vpop.f32.mrf.mxu1 }
 0x235   :  { %v687_v44 = vadd.f32 1.0, %v686_v2 }
 0x237   :  { %v707_v47 = vadd.f32 %v706_v3, %v687_v44 }
 0x239   :  { %v709_v5 = vmul.f32 0.125, %v707_v47 }
 0x23b   :  { %v710_v6 = vmax.f32 %v709_v5, 0.125 }
 0x23d   :  { %v711_v7 = vsub.f32 %v709_v5, %v710_v6  ;;  %v714_v8 = vsub.f32 0.125, %v710_v6 }
 0x23f   :  { %v715_v10 = vmul.f32 1.442695, %v714_v8  ;;  %v712_v11 = vmul.f32 1.442695, %v711_v7 }
 0x241   :  { %1149 = vpow2.f32 %v715_v10 }
 0x242   :  { %1151 = vpow2.f32 %v712_v11 }
 0x247   :  { %v1150_v13 = vpop.eup %1149 }
 0x248   :  { %v717_v14 = vmul.f32 7.0, %v1150_v13  ;;  %v1152_v15 = vpop.eup %1151 }
 0x24a   :  { %v718_v16 = vadd.f32 %v1152_v15, %v717_v14 }
 0x24c   :  { %1153 = vrcp.f32 %v718_v16  ;;  %v730_v20 = vand.u32 2147483648, %v718_v16  ;;  %v728_v22 = vand.u32 2147483647, %v718_v16  ;;  %vm724_vm9 = vweird.f32 %v718_v16 }
 0x24e   :  { %v731_v24 = vor.u32 1.1754944e-38, %v730_v20  ;;  %vm729_vm11 = vcmp.eq.f32.partialorder %v728_v22, 8.507059e+37 }
 0x252   :  { %v1154_v17 = vpop.eup %1153 }
 0x253   :  { %v720_v18 = vmul.f32 %v1154_v17, %v718_v16  ;;  %vm725_vm8 = vweird.f32 %v1154_v17 }
 0x254   :  { %vm726_vm10 = vmor %vm724_vm9, %vm725_vm8 }
 0x255   :  { %v721_v19 = vsub.f32 1.0, %v720_v18 }
 0x257   :  { %v722_v21 = vmul.f32 %v1154_v17, %v721_v19 }
 0x259   :  { %v723_v23 = vadd.f32 %v1154_v17, %v722_v21 }
 0x25b   :  { %v727_v25 = vsel %vm726_vm10, %v1154_v17, %v723_v23 }
 0x25c   :  { %v732_v26 = vsel %vm729_vm11, %v731_v24, %v727_v25 }
 0x25d   :  { %v733_v4 = vmul.f32 %v1152_v15, %v732_v26 }
 0x25f   :  { %1070 = vmatmul.msk.f32.vlgmr.msra.gmra.mxu2 %vm739_vm12, %v733_v4  ;;  %1072 = vmatmul.msk.f32.vlgmr.msra.gmra.mxu3 %vm739_vm12, %v733_v4 }
 0x2e2   :  { %v765_v27 = vpop.f32.mrf.mxu2  ;;  %v785_v28 = vpop.f32.mrf.mxu3 }
 0x2e3   :  { %v789_v29 = vmul.f32 %v785_v28, %v1302_v57  ;;  %v788_v30 = vmul.f32 %v765_v27, %v1299_v54 }
 0x2e5   :  { %v792_v31 = vrot.slane %v789_v29, 6 }
 0x2e7   :  { %v793_v33 = vsel %vm54_vm0, %v788_v30, %v792_v31 }
 0x2e8   :  { %795 = vst [vmem:[#allocation5] sm:$0xf] %v793_v33 }
 0x2e9   :  { %806 = dma.vmem_to_hbm [thread:$0]  %s802_s4, 64, %s804_s12, [#allocation4]  }
 0x2ea   :  { %1205 = dma.done.wait [#allocation4], 64  }
 0x2eb   :  { %1206 = vsyncadd [#allocation4], 4294967232 }
 0x2ec   :  { %811 = vsyncpa [#allocation3], 1 }
 0x2ed   :  { %812 = vsyncpa [#allocation4], 1 }

</bundles_post_ra>
